<compile_context>
chip_gen: v7x
topology: tpu7x:2x2x1
jax: 0.10.0
libtpu: 0.0.40
codegen_flags: <defaults>
</compile_context>

<pallas_src>
import jax
import jax.numpy as jnp
from jax.experimental import pallas as pl
from jax.experimental.pallas import tpu as pltpu

BN_EPS = 1e-5
LANE = 128
SLIVER = 8                               # halo sliver rows (>= conv pad, 8-aligned)
VMEM_LIMIT_BYTES = 48 * 1024 * 1024      # explicit scoped-VMEM limit (all gens)
VMEM_BUDGET_BYTES = 36 * 1024 * 1024     # target usage for tile-size selection


def _round_up(n, m):
    return ((n + m - 1) // m) * m


def _pad_axis(x, axis, size):
    amt = size - x.shape[axis]
    if amt <= 0:
        return x
    cfg = [(0, 0)] * x.ndim
    cfg[axis] = (0, amt)
    return jnp.pad(x, cfg)


# ---------------------------------------------------------------------------
# Kernel builder
# ---------------------------------------------------------------------------
def _build_kernel(*, K, pad, tT, T_real, B, Cin, Cout, bn_in, add_bias,
                  emit_stats, emit_halo, mask_out):
    """One fused layer tile: [BN(prev)+tanh] -> conv(K taps) -> [bias] -> writes.

    Ref order: x, tail(prev tile), head(next tile), w, [stats_in, gamma, beta],
               [bias], y, [head_out, tail_out], [stats_out].
    """
    tTw = tT + 2 * SLIVER                # full-sliver halo window rows
    # Per-tap Cin=128 would underfill the 256-deep MXU -> keep folded im2col
    # for the thin layer; Cin>=256 uses K accumulated matmuls (no wide temp).
    use_im2col = Cin <= 128

    def kernel(*refs):
        it = iter(refs)
        x_ref = next(it)                          # [B, tT, Cin]  current tile
        tail_ref = next(it)                       # [B, 8, Cin]   prev tile's last 8 rows
        head_ref = next(it)                       # [B, 8, Cin]   next tile's first 8 rows
        w_ref = next(it)                          # [K*Cin, Cout] folded weights (bf16)
        if bn_in:
            stats_ref = next(it)                  # [2, Cin] (sum, sumsq) of prev pre-BN out
            gamma_ref = next(it)                  # [1, Cin]
            beta_ref = next(it)                   # [1, Cin]
        if add_bias:
            bias_ref = next(it)                   # [1, Cout]
        y_ref = next(it)                          # [B, tT, Cout]
        if emit_halo:
            head_out_ref = next(it)               # [B, 8, Cout]
            tail_out_ref = next(it)               # [B, 8, Cout]
        if emit_stats:
            stats_out_ref = next(it)              # [1, 2, Cout] per-tile partials

        i = pl.program_id(0)
        t0 = i * tT

        # Halo'd window rows [t0-8, t0+tT+8): neighbor slivers + current tile.
        # All three pieces are 8-row aligned, and all were fetched by the
        # auto-pipelined BlockSpecs (DMA hidden behind the previous tile).
        win = jnp.concatenate([tail_ref[...], x_ref[...], head_ref[...]],
                              axis=1)                         # [B, tTw, Cin] bf16

        rows_in = jax.lax.broadcasted_iota(jnp.int32, (1, tTw, 1), 1) + (t0 - SLIVER)
        in_valid = (rows_in >= 0) & (rows_in < T_real)

        if bn_in:
            # Fused BatchNorm (training-mode batch stats of the previous
            # layer's pre-BN output) + tanh over the whole window.
            # NOTE: one-pass E[x^2]-mean^2 in f32 (fine at 5e-2 tolerance).
            inv_n = 1.0 / float(B * T_real)
            st = stats_ref[...]
            mean = st[0:1, :] * inv_n
            var = jnp.maximum(st[1:2, :] * inv_n - mean * mean, 0.0)
            scale = jax.lax.rsqrt(var + BN_EPS) * gamma_ref[...]
            shift = beta_ref[...] - mean * scale
            a = jnp.tanh(win.astype(jnp.float32) * scale[None] + shift[None])
        else:
            a = win.astype(jnp.float32)
        # Zero rows outside the real sequence: conv "same" zero padding past
        # the ends + the rows added by padding T up to a tile multiple.
        a = jnp.where(in_valid, a, 0.0).astype(jnp.bfloat16)

        # --- conv as MXU matmul(s), f32 accumulation -------------------------
        base = SLIVER - pad
        if use_im2col:
            cols = jnp.concatenate(
                [a[:, base + k:base + k + tT, :] for k in range(K)], axis=-1)
            acc = jnp.dot(cols.reshape(B * tT, K * Cin), w_ref[...],
                          preferred_element_type=jnp.float32)
        else:
            acc = None
            for k in range(K):
                a_k = a[:, base + k:base + k + tT, :].reshape(B * tT, Cin)
                part = jnp.dot(a_k, w_ref[k * Cin:(k + 1) * Cin, :],
                               preferred_element_type=jnp.float32)
                acc = part if acc is None else acc + part

        if add_bias:
            acc = acc + bias_ref[...]

        y3 = acc.reshape(B, tT, Cout)
        if mask_out:                               # T was padded: keep pads at 0
            rows_out = jax.lax.broadcasted_iota(jnp.int32, (1, tT, 1), 1) + t0
            y3 = jnp.where(rows_out < T_real, y3, 0.0)

        if emit_halo:
            yb = y3.astype(jnp.bfloat16)
            y_ref[...] = yb
            head_out_ref[...] = yb[:, :SLIVER, :]
            tail_out_ref[...] = yb[:, tT - SLIVER:, :]
        else:
            y_ref[...] = y3.astype(y_ref.dtype)

        if emit_stats:
            # Per-tile partial (sum, sumsq) of this layer's pre-BN output,
            # taken from the f32 accumulator (reduced across tiles in JAX).
            y2 = y3.reshape(B * tT, Cout)
            s1 = jnp.sum(y2, axis=0, keepdims=True)
            s2 = jnp.sum(y2 * y2, axis=0, keepdims=True)
            stats_out_ref[...] = jnp.concatenate([s1, s2], axis=0).reshape(1, 2, Cout)

    return kernel


# ---------------------------------------------------------------------------
# One fused layer = one pallas_call
# ---------------------------------------------------------------------------
def _layer_call(x, head, tail, w_fold, *, T_real, tT, pad, K,
                stats_in=None, gamma=None, beta=None, bias=None,
                emit_stats=True, emit_halo=True, out_f32=False):
    """x: [B, T_pad, CinP] bf16 pre-BN activation (or raw input).
    head/tail: [B, n_t*8, CinP] bf16 slivers (first/last 8 rows of each tile).
    Returns (y, [head_out, tail_out], [stats_partial]) per the emit flags."""
    B, T_pad, Cin = x.shape
    assert T_pad % tT == 0
    n_t = T_pad // tT
    KC, Cout = w_fold.shape
    assert KC == K * Cin
    bn_in = stats_in is not None
    add_bias = bias is not None
    mask_out = T_pad != T_real

    kernel = _build_kernel(K=K, pad=pad, tT=tT, T_real=T_real, B=B, Cin=Cin,
                           Cout=Cout, bn_in=bn_in, add_bias=add_bias,
                           emit_stats=emit_stats, emit_halo=emit_halo,
                           mask_out=mask_out)

    const = lambda i: (0, 0)
    in_specs = [
        pl.BlockSpec((B, tT, Cin), lambda i: (0, i, 0)),
        # prev tile's tail / next tile's head (clamped at the ends; the invalid
        # boundary rows are zeroed in-kernel by the sequence-length mask).
        pl.BlockSpec((B, SLIVER, Cin), lambda i: (0, jnp.maximum(i - 1, 0), 0)),
        pl.BlockSpec((B, SLIVER, Cin), lambda i: (0, jnp.minimum(i + 1, n_t - 1), 0)),
        pl.BlockSpec((KC, Cout), const),
    ]
    args = [x, tail, head, w_fold]
    if bn_in:
        in_specs += [pl.BlockSpec((2, Cin), const),
                     pl.BlockSpec((1, Cin), const),
                     pl.BlockSpec((1, Cin), const)]
        args += [stats_in, gamma, beta]
    if add_bias:
        in_specs.append(pl.BlockSpec((1, Cout), const))
        args.append(bias)

    y_dtype = jnp.float32 if out_f32 else jnp.bfloat16
    out_shape = [jax.ShapeDtypeStruct((B, T_pad, Cout), y_dtype)]
    out_specs = [pl.BlockSpec((B, tT, Cout), lambda i: (0, i, 0))]
    if emit_halo:
        out_shape.append(jax.ShapeDtypeStruct((B, n_t * SLIVER, Cout), jnp.bfloat16))
        out_specs.append(pl.BlockSpec((B, SLIVER, Cout), lambda i: (0, i, 0)))
        out_shape.append(jax.ShapeDtypeStruct((B, n_t * SLIVER, Cout), jnp.bfloat16))
        out_specs.append(pl.BlockSpec((B, SLIVER, Cout), lambda i: (0, i, 0)))
    if emit_stats:
        out_shape.append(jax.ShapeDtypeStruct((n_t, 2, Cout), jnp.float32))
        out_specs.append(pl.BlockSpec((1, 2, Cout), lambda i: (i, 0, 0)))

    return pl.pallas_call(
        kernel,
        grid=(n_t,),
        in_specs=in_specs,
        out_specs=tuple(out_specs),
        out_shape=tuple(out_shape),
        compiler_params=pltpu.CompilerParams(
            dimension_semantics=("parallel",),   # per-tile partial stats -> no
                                                 # cross-tile dependency left
            vmem_limit_bytes=VMEM_LIMIT_BYTES),
    )(*args)


# ---------------------------------------------------------------------------
# VMEM-budget-driven tile selection
# ---------------------------------------------------------------------------
def _vmem_bytes(B, tT, CinP, CoutP, K, pad):
    tTw = tT + 2 * SLIVER
    bf, f4 = 2, 4
    io = 2 * B * tT * CinP * bf                      # x in (double-buffered)
    io += 2 * 2 * B * SLIVER * CinP * bf             # head/tail in
    io += 2 * K * CinP * CoutP * bf                  # weights (2 bufs, const idx)
    io += 2 * B * tT * CoutP * f4                    # y out (f32 worst case)
    io += 2 * 2 * B * SLIVER * CoutP * bf            # head/tail out
    io += 2 * (2 * CoutP + 4 * CinP + CoutP) * f4    # stats / gamma / beta / bias
    tmp = B * tTw * CinP * (f4 + bf)                 # f32 + bf16 window
    tmp += B * tT * (K * CinP if CinP <= 128 else CinP) * bf   # im2col / per-tap
    tmp += 2 * B * tT * CoutP * f4                   # f32 acc (+ masked copy)
    return int(1.2 * (io + tmp))


def _pick_tile(*, T, B, K, pad, CinP, CoutP):
    cap = min(_round_up(T, 8), 1024)
    if T >= 128:                                     # keep >=2 tiles for megacore
        cap = min(cap, _round_up((T + 1) // 2, 8))
    best = 8
    t = 8
    while t <= cap:
        if _vmem_bytes(B, t, CinP, CoutP, K, pad) <= VMEM_BUDGET_BYTES:
            best = t
        t += 8
    return best


# ---------------------------------------------------------------------------
# Parameter / layout plumbing (glue)
# ---------------------------------------------------------------------------
def _prep_weight(w):
    """[K, Cin, Cout] f32 -> lane-padded, tap-folded [K*CinP, CoutP] bf16."""
    K, Cin, Cout = w.shape
    CinP, CoutP = _round_up(Cin, LANE), _round_up(Cout, LANE)
    wp = _pad_axis(_pad_axis(w, 1, CinP), 2, CoutP)
    return wp.reshape(K * CinP, CoutP).astype(jnp.bfloat16)


def _prep_vec(v, size):
    """[C] -> [1, sizeP] f32 (zero lane padding)."""
    return _pad_axis(v.reshape(1, -1).astype(jnp.float32), 1, size)


def _slivers(y, n_t, tT):
    """head[i] = first 8 rows of tile i, tail[i] = last 8 rows ([B, n_t*8, C])."""
    B, _, C = y.shape
    yr = y.reshape(B, n_t, tT, C)
    head = yr[:, :, :SLIVER, :].reshape(B, n_t * SLIVER, C)
    tail = yr[:, :, tT - SLIVER:, :].reshape(B, n_t * SLIVER, C)
    return head, tail


def postnet_forward(x_bct, params, *, tT=None):
    """PostNet forward.  x_bct: [B, C, T] (PyTorch layout) -> [B, C, T]."""
    B, C0, T = x_bct.shape
    K = params["conv1"]["w"].shape[0]
    pad = K // 2
    assert pad <= SLIVER
    nf = params["conv1"]["w"].shape[2]
    C0P = _round_up(C0, LANE)
    CfP = _round_up(nf, LANE)

    if tT is None:
        cmax = max(C0P, CfP)
        tT = _pick_tile(T=T, B=B, K=K, pad=pad, CinP=cmax, CoutP=cmax)
    assert tT % 8 == 0 and tT >= 8
    T_pad = _round_up(T, tT)
    n_t = T_pad // tT

    # One-time layout: [B, T_pad, C0P] bf16, zero padded along T and lanes.
    x = jnp.transpose(x_bct, (0, 2, 1)).astype(jnp.bfloat16)
    x = _pad_axis(_pad_axis(x, 1, T_pad), 2, C0P)
    head, tail = _slivers(x, n_t, tT)

    common = dict(T_real=T, tT=tT, pad=pad, K=K)

    # Layer 1: conv1 (bias dropped - cancelled by the following BN) + stats.
    y, head, tail, st = _layer_call(x, head, tail,
                                    _prep_weight(params["conv1"]["w"]),
                                    emit_stats=True, emit_halo=True, **common)
    stats = jnp.sum(st, axis=0)                                # [2, CfP]

    # Layers 2-4: fused BN(prev)+tanh -> conv_i + stats + halo slivers.
    for li in (2, 3, 4):
        prev = params[f"conv{li - 1}"]
        Cp = y.shape[-1]
        y, head, tail, st = _layer_call(
            y, head, tail, _prep_weight(params[f"conv{li}"]["w"]),
            stats_in=stats, gamma=_prep_vec(prev["gamma"], Cp),
            beta=_prep_vec(prev["beta"], Cp),
            emit_stats=True, emit_halo=True, **common)
        stats = jnp.sum(st, axis=0)

    # Layer 5: fused BN(conv4)+tanh -> conv5 + bias, f32 output, no stats/halo.
    p4, p5 = params["conv4"], params["conv5"]
    Cp = y.shape[-1]
    w5 = _prep_weight(p5["w"])
    (out,) = _layer_call(y, head, tail, w5,
                         stats_in=stats, gamma=_prep_vec(p4["gamma"], Cp),
                         beta=_prep_vec(p4["beta"], Cp),
                         bias=_prep_vec(p5["b"], w5.shape[1]),
                         emit_stats=False, emit_halo=False, out_f32=True, **common)

    out = out[:, :T, :C0]                                      # strip padding
    return jnp.transpose(out, (0, 2, 1))                       # [B, C, T]


# ---------------------------------------------------------------------------
# Deterministic parameter construction + pure-JAX f32 reference
# ---------------------------------------------------------------------------
def make_params(key, num_mels, num_filters, kernel_size=5):
    dims = [(num_mels, num_filters), (num_filters, num_filters),
            (num_filters, num_filters), (num_filters, num_filters),
            (num_filters, num_mels)]
    params = {}
    for i, (cin, cout) in enumerate(dims, start=1):
        key, kw, kb, kg, kbeta = jax.random.split(key, 5)
        p = {
            "w": 0.1 * jax.random.normal(kw, (kernel_size, cin, cout), jnp.float32),
            "b": 0.1 * jax.random.normal(kb, (cout,), jnp.float32),
        }
        if i < 5:
            p["gamma"] = 1.0 + 0.1 * jax.random.normal(kg, (cout,), jnp.float32)
            p["beta"] = 0.1 * jax.random.normal(kbeta, (cout,), jnp.float32)
        params[f"conv{i}"] = p
    return params


def _conv1d_ref(x_bct, w_kio, b):
    w_oik = jnp.transpose(w_kio, (2, 1, 0))                    # [Cout, Cin, K]
    pad = w_kio.shape[0] // 2
    y = jax.lax.conv_general_dilated(
        x_bct, w_oik, window_strides=(1,), padding=[(pad, pad)],
        dimension_numbers=("NCH", "OIH", "NCH"),
        precision=jax.lax.Precision.HIGHEST)
    return y + b[None, :, None]


def postnet_ref(x_bct, params):
    x = x_bct.astype(jnp.float32)
    for i in range(1, 5):
        p = params[f"conv{i}"]
        y = _conv1d_ref(x, p["w"], p["b"])
        mean = jnp.mean(y, axis=(0, 2), keepdims=True)
        var = jnp.mean((y - mean) ** 2, axis=(0, 2), keepdims=True)
        y = (y - mean) * jax.lax.rsqrt(var + BN_EPS)
        y = y * p["gamma"][None, :, None] + p["beta"][None, :, None]
        x = jnp.tanh(y)
    p = params["conv5"]
    return _conv1d_ref(x, p["w"], p["b"])


# ---------------------------------------------------------------------------
if __name__ == "__main__":
    def run_case(key, *, B, num_mels, num_filters, T, tT, tol):
        key, kx = jax.random.split(key)
        x = jax.random.normal(kx, (B, num_mels, T), jnp.float32)   # PyTorch [B, C, T]
        params = make_params(key, num_mels, num_filters, kernel_size=5)
        out = jax.block_until_ready(postnet_forward(x, params, tT=tT))
        ref = jax.block_until_ready(postnet_ref(x, params))
        assert out.shape == (B, num_mels, T), out.shape
        err = float(jnp.max(jnp.abs(out - ref)))
        # bf16 activations/weights on the MXU vs f32 reference -> relaxed tol.
        assert jnp.allclose(out, ref, atol=tol, rtol=tol), f"max abs err = {err}"

    k1, k2 = jax.random.split(jax.random.PRNGKey(0))
    # Case 1: multi-tile halos, T not a multiple of the tile (padded + masked),
    #         im2col path (Cin padded to 128), forced small tile.
    run_case(k1, B=2, num_mels=8, num_filters=16, T=30, tT=8, tol=5e-2)
    # Case 2: wider middle layers (Cin padded to 256) -> per-tap K-matmul path,
    #         auto VMEM-budget tile selection (single tile).
    run_case(k2, B=2, num_mels=8, num_filters=192, T=24, tT=None, tol=5e-2)

    print("KERNEL_OK")
</pallas_src>

<mosaic_0001>
module attributes {stable_mosaic.version = 11 : i64} {
  func.func @kernel(%arg0: i32, %arg1: memref<2x8x128xbf16, #tpu.memory_space<vmem>>, %arg2: memref<2x8x128xbf16, #tpu.memory_space<vmem>>, %arg3: memref<2x8x128xbf16, #tpu.memory_space<vmem>>, %arg4: memref<640x128xbf16, #tpu.memory_space<vmem>>, %arg5: memref<2x8x128xbf16, #tpu.memory_space<vmem>>, %arg6: memref<2x8x128xbf16, #tpu.memory_space<vmem>>, %arg7: memref<2x8x128xbf16, #tpu.memory_space<vmem>>, %arg8: memref<1x2x128xf32, #tpu.memory_space<vmem>>) attributes {dimension_semantics = [#tpu.dimension_semantics<parallel>], iteration_bounds = array<i64: 4>, scalar_prefetch = 0 : i64, scratch_operands = 0 : i64, tpu.core_type = #tpu.core_type<tc>, window_params = [{transform_indices = @transform_0, window_bounds = array<i64: 2, 8, 128>}, {transform_indices = @transform_1, window_bounds = array<i64: 2, 8, 128>}, {transform_indices = @transform_2, window_bounds = array<i64: 2, 8, 128>}, {pipeline_mode = #tpu.pipeline_mode<synchronous>, transform_indices = @transform_3, window_bounds = array<i64: 640, 128>}, {transform_indices = @transform_4, window_bounds = array<i64: 2, 8, 128>}, {transform_indices = @transform_5, window_bounds = array<i64: 2, 8, 128>}, {transform_indices = @transform_6, window_bounds = array<i64: 2, 8, 128>}, {transform_indices = @transform_7, window_bounds = array<i64: 1, 2, 128>}]} {
    %c8_i32 = arith.constant 8 : i32
    %0 = arith.muli %arg0, %c8_i32 : i32
    %c0 = arith.constant 0 : index
    %c0_0 = arith.constant 0 : index
    %c0_1 = arith.constant 0 : index
    %1 = vector.load %arg2[%c0, %c0_0, %c0_1] : memref<2x8x128xbf16, #tpu.memory_space<vmem>>, vector<2x8x128xbf16>
    %c0_2 = arith.constant 0 : index
    %c0_3 = arith.constant 0 : index
    %c0_4 = arith.constant 0 : index
    %2 = vector.load %arg1[%c0_2, %c0_3, %c0_4] : memref<2x8x128xbf16, #tpu.memory_space<vmem>>, vector<2x8x128xbf16>
    %c0_5 = arith.constant 0 : index
    %c0_6 = arith.constant 0 : index
    %c0_7 = arith.constant 0 : index
    %3 = vector.load %arg3[%c0_5, %c0_6, %c0_7] : memref<2x8x128xbf16, #tpu.memory_space<vmem>>, vector<2x8x128xbf16>
    %4 = tpu.concatenate %1, %2, %3 in 1 : vector<2x8x128xbf16>, vector<2x8x128xbf16>, vector<2x8x128xbf16> -> vector<2x24x128xbf16>
    %5 = tpu.iota {dimensions = array<i32: 1>} : vector<1x24x1xi32>
    %c8_i32_8 = arith.constant 8 : i32
    %6 = arith.subi %0, %c8_i32_8 : i32
    %7 = vector.broadcast %6 : i32 to vector<1x24x1xi32>
    %8 = arith.addi %5, %7 : vector<1x24x1xi32>
    %c0_i32 = arith.constant 0 : i32
    %9 = vector.broadcast %c0_i32 : i32 to vector<1x24x1xi32>
    %10 = arith.cmpi sge, %8, %9 : vector<1x24x1xi32>
    %c30_i32 = arith.constant 30 : i32
    %11 = vector.broadcast %c30_i32 : i32 to vector<1x24x1xi32>
    %12 = arith.cmpi slt, %8, %11 : vector<1x24x1xi32>
    %13 = arith.andi %10, %12 : vector<1x24x1xi1>
    %14 = arith.extf %4 : vector<2x24x128xbf16> to vector<2x24x128xf32>
    %cst = arith.constant 0.000000e+00 : f32
    %15 = vector.shape_cast %13 : vector<1x24x1xi1> to vector<1x24x1xi1>
    %16 = vector.broadcast %15 : vector<1x24x1xi1> to vector<2x24x128xi1>
    %17 = vector.broadcast %cst : f32 to vector<2x24x128xf32>
    %18 = arith.select %16, %14, %17 : vector<2x24x128xi1>, vector<2x24x128xf32>
    %19 = arith.truncf %18 : vector<2x24x128xf32> to vector<2x24x128xbf16>
    %20 = vector.extract_strided_slice %19 {offsets = [0, 6, 0], sizes = [2, 8, 128], strides = [1, 1, 1]} : vector<2x24x128xbf16> to vector<2x8x128xbf16>
    %21 = vector.extract_strided_slice %19 {offsets = [0, 7, 0], sizes = [2, 8, 128], strides = [1, 1, 1]} : vector<2x24x128xbf16> to vector<2x8x128xbf16>
    %22 = vector.extract_strided_slice %19 {offsets = [0, 8, 0], sizes = [2, 8, 128], strides = [1, 1, 1]} : vector<2x24x128xbf16> to vector<2x8x128xbf16>
    %23 = vector.extract_strided_slice %19 {offsets = [0, 9, 0], sizes = [2, 8, 128], strides = [1, 1, 1]} : vector<2x24x128xbf16> to vector<2x8x128xbf16>
    %24 = vector.extract_strided_slice %19 {offsets = [0, 10, 0], sizes = [2, 8, 128], strides = [1, 1, 1]} : vector<2x24x128xbf16> to vector<2x8x128xbf16>
    %25 = tpu.concatenate %20, %21, %22, %23, %24 in 2 : vector<2x8x128xbf16>, vector<2x8x128xbf16>, vector<2x8x128xbf16>, vector<2x8x128xbf16>, vector<2x8x128xbf16> -> vector<2x8x640xbf16>
    %26 = vector.shape_cast %25 : vector<2x8x640xbf16> to vector<16x640xbf16>
    %c0_9 = arith.constant 0 : index
    %c0_10 = arith.constant 0 : index
    %27 = vector.load %arg4[%c0_9, %c0_10] : memref<640x128xbf16, #tpu.memory_space<vmem>>, vector<640x128xbf16>
    %cst_11 = arith.constant dense<0.000000e+00> : vector<16x128xf32>
    %28 = tpu.matmul %26, %27, %cst_11 {dimension_numbers = #tpu.dot_dimension_numbers<[1], [0], [0], [1], [0, 0, 1, 1], [], []>} : vector<16x640xbf16>, vector<640x128xbf16>, vector<16x128xf32> -> vector<16x128xf32>
    %29 = vector.shape_cast %28 : vector<16x128xf32> to vector<2x8x128xf32>
    %30 = tpu.iota {dimensions = array<i32: 1>} : vector<1x8x1xi32>
    %31 = vector.broadcast %0 : i32 to vector<1x8x1xi32>
    %32 = arith.addi %30, %31 : vector<1x8x1xi32>
    %c30_i32_12 = arith.constant 30 : i32
    %33 = vector.broadcast %c30_i32_12 : i32 to vector<1x8x1xi32>
    %34 = arith.cmpi slt, %32, %33 : vector<1x8x1xi32>
    %cst_13 = arith.constant 0.000000e+00 : f32
    %35 = vector.shape_cast %34 : vector<1x8x1xi1> to vector<1x8x1xi1>
    %36 = vector.broadcast %35 : vector<1x8x1xi1> to vector<2x8x128xi1>
    %37 = vector.broadcast %cst_13 : f32 to vector<2x8x128xf32>
    %38 = arith.select %36, %29, %37 : vector<2x8x128xi1>, vector<2x8x128xf32>
    %39 = arith.truncf %38 : vector<2x8x128xf32> to vector<2x8x128xbf16>
    %c0_14 = arith.constant 0 : index
    %c0_15 = arith.constant 0 : index
    %c0_16 = arith.constant 0 : index
    %40 = vector.load %arg5[%c0_14, %c0_15, %c0_16] : memref<2x8x128xbf16, #tpu.memory_space<vmem>>, vector<2x8x128xbf16>
    tpu.vector_store %arg5[%c0_14, %c0_15, %c0_16], %39 {strides = array<i32>} : memref<2x8x128xbf16, #tpu.memory_space<vmem>>, vector<2x8x128xbf16>,
    %c0_17 = arith.constant 0 : index
    %c0_18 = arith.constant 0 : index
    %c0_19 = arith.constant 0 : index
    %41 = vector.load %arg6[%c0_17, %c0_18, %c0_19] : memref<2x8x128xbf16, #tpu.memory_space<vmem>>, vector<2x8x128xbf16>
    tpu.vector_store %arg6[%c0_17, %c0_18, %c0_19], %39 {strides = array<i32>} : memref<2x8x128xbf16, #tpu.memory_space<vmem>>, vector<2x8x128xbf16>,
    %c0_20 = arith.constant 0 : index
    %c0_21 = arith.constant 0 : index
    %c0_22 = arith.constant 0 : index
    %42 = vector.load %arg7[%c0_20, %c0_21, %c0_22] : memref<2x8x128xbf16, #tpu.memory_space<vmem>>, vector<2x8x128xbf16>
    tpu.vector_store %arg7[%c0_20, %c0_21, %c0_22], %39 {strides = array<i32>} : memref<2x8x128xbf16, #tpu.memory_space<vmem>>, vector<2x8x128xbf16>,
    %43 = vector.shape_cast %38 : vector<2x8x128xf32> to vector<16x128xf32>
    %cst_23 = arith.constant dense<0.000000e+00> : vector<128xf32>
    %44 = vector.multi_reduction <add>, %43, %cst_23 [0] : vector<16x128xf32> to vector<128xf32>
    %45 = vector.shape_cast %44 : vector<128xf32> to vector<1x128xf32>
    %46 = arith.mulf %43, %43 : vector<16x128xf32>
    %cst_24 = arith.constant dense<0.000000e+00> : vector<128xf32>
    %47 = vector.multi_reduction <add>, %46, %cst_24 [0] : vector<16x128xf32> to vector<128xf32>
    %48 = vector.shape_cast %47 : vector<128xf32> to vector<1x128xf32>
    %49 = tpu.concatenate %45, %48 in 0 : vector<1x128xf32>, vector<1x128xf32> -> vector<2x128xf32>
    %50 = vector.shape_cast %49 : vector<2x128xf32> to vector<1x2x128xf32>
    %c0_25 = arith.constant 0 : index
    %c0_26 = arith.constant 0 : index
    %c0_27 = arith.constant 0 : index
    %51 = vector.load %arg8[%c0_25, %c0_26, %c0_27] : memref<1x2x128xf32, #tpu.memory_space<vmem>>, vector<1x2x128xf32>
    tpu.vector_store %arg8[%c0_25, %c0_26, %c0_27], %50 {strides = array<i32>} : memref<1x2x128xf32, #tpu.memory_space<vmem>>, vector<1x2x128xf32>,
    return
  }
  func.func @transform_0(%arg0: i32) -> (i32, i32, i32) {
    %c0_i32 = arith.constant 0 : i32
    %c0_i32_0 = arith.constant 0 : i32
    %c0_i32_1 = arith.constant 0 : i32
    return %c0_i32, %arg0, %c0_i32_0 : i32, i32, i32
  }
  func.func @transform_1(%arg0: i32) -> (i32, i32, i32) {
    %c1_i32 = arith.constant 1 : i32
    %0 = arith.subi %arg0, %c1_i32 : i32
    %c0_i32 = arith.constant 0 : i32
    %1 = arith.maxsi %0, %c0_i32 : i32
    %c0_i32_0 = arith.constant 0 : i32
    %c0_i32_1 = arith.constant 0 : i32
    %c0_i32_2 = arith.constant 0 : i32
    return %c0_i32_0, %1, %c0_i32_1 : i32, i32, i32
  }
  func.func @transform_2(%arg0: i32) -> (i32, i32, i32) {
    %c1_i32 = arith.constant 1 : i32
    %0 = arith.addi %arg0, %c1_i32 : i32
    %c3_i32 = arith.constant 3 : i32
    %1 = arith.minsi %0, %c3_i32 : i32
    %c0_i32 = arith.constant 0 : i32
    %c0_i32_0 = arith.constant 0 : i32
    %c0_i32_1 = arith.constant 0 : i32
    return %c0_i32, %1, %c0_i32_0 : i32, i32, i32
  }
  func.func @transform_3(%arg0: i32) -> (i32, i32) {
    %c0_i32 = arith.constant 0 : i32
    %c0_i32_0 = arith.constant 0 : i32
    %c0_i32_1 = arith.constant 0 : i32
    return %c0_i32, %c0_i32_0 : i32, i32
  }
  func.func @transform_4(%arg0: i32) -> (i32, i32, i32) {
    %c0_i32 = arith.constant 0 : i32
    %c0_i32_0 = arith.constant 0 : i32
    %c0_i32_1 = arith.constant 0 : i32
    return %c0_i32, %arg0, %c0_i32_0 : i32, i32, i32
  }
  func.func @transform_5(%arg0: i32) -> (i32, i32, i32) {
    %c0_i32 = arith.constant 0 : i32
    %c0_i32_0 = arith.constant 0 : i32
    %c0_i32_1 = arith.constant 0 : i32
    return %c0_i32, %arg0, %c0_i32_0 : i32, i32, i32
  }
  func.func @transform_6(%arg0: i32) -> (i32, i32, i32) {
    %c0_i32 = arith.constant 0 : i32
    %c0_i32_0 = arith.constant 0 : i32
    %c0_i32_1 = arith.constant 0 : i32
    return %c0_i32, %arg0, %c0_i32_0 : i32, i32, i32
  }
  func.func @transform_7(%arg0: i32) -> (i32, i32, i32) {
    %c0_i32 = arith.constant 0 : i32
    %c0_i32_0 = arith.constant 0 : i32
    %c0_i32_1 = arith.constant 0 : i32
    return %arg0, %c0_i32, %c0_i32_0 : i32, i32, i32
  }
}

</mosaic_0001>

<bundles_post_ra>
// kernel: tpu_custom_call.1
= control target key start
LH: loop header
LB: loop body
LE: loop exit
PB: predicated region body
PF: predicated region fallthrough
CT: control target
= control target key end

     0   :  { %s2764_s0 = inlined_call_operand.hbm [shape: bf16[2,32,128], index: 0, kind: input, shape index: {}]   ;;  %s2765_s1 = inlined_call_operand.hbm [shape: bf16[2,32,128], index: 1, kind: input, shape index: {}]   ;;  %s2766_s2 = inlined_call_operand.hbm [shape: bf16[2,32,128], index: 2, kind: input, shape index: {}]   ;;  %s2767_s3 = inlined_call_operand.hbm [shape: bf16[640,128], index: 3, kind: input, shape index: {}]   ;;  %s2768_s4 = inlined_call_operand.hbm [shape: bf16[2,32,128], index: 4, kind: output, shape index: {0}]   ;;  %s2769_s5 = inlined_call_operand.hbm [shape: bf16[2,32,128], index: 5, kind: output, shape index: {1}]   ;;  %s2770_s6 = inlined_call_operand.hbm [shape: bf16[2,32,128], index: 6, kind: output, shape index: {2}]   ;;  %s2771_s7 = inlined_call_operand.hbm [shape: f32[4,2,128], index: 7, kind: output, shape index: {3}]  }
   0x1   :  { %2792 = sst [smem:[#allocation28_spill]] %s2764_s0 }
   0x2   :  { %2793 = sst [smem:[#allocation29_spill]] %s2765_s1 }
   0x3   :  { %2794 = sst [smem:[#allocation30_spill]] %s2767_s3 }
   0x4   :  { %2795 = sst [smem:[#allocation31_spill]] %s2768_s4 }
   0x5   :  { %2796 = sst [smem:[#allocation32_spill]] %s2769_s5 }
   0x6   :  { %2797 = sst [smem:[#allocation33_spill]] %s2770_s6 }
   0x7   :  { %2798 = sst [smem:[#allocation34_spill]] %s2771_s7 }
   0x8   :  { %13 = vsyncpa [#allocation3], 0 }
   0x9   :  { %15 = vsyncpa [#allocation3 + $0x1], 0 }
   0xa   :  { %16 = vsyncpa [#allocation6], 0 }
   0xb   :  { %18 = vsyncpa [#allocation6 + $0x1], 0 }
   0xc   :  { %19 = vsyncpa [#allocation9], 0 }
   0xd   :  { %20 = vsyncpa [#allocation4], 0 }
   0xe   :  { %22 = vsyncpa [#allocation4 + $0x1], 0 }
   0xf   :  { %23 = vsyncpa [#allocation12], 0 }
  0x10   :  { %25 = vsyncpa [#allocation12 + $0x1], 0 }
  0x11   :  { %26 = vsyncpa [#allocation15], 0 }
  0x12   :  { %28 = vsyncpa [#allocation15 + $0x1], 0  ;;  %s2156_s24 = smov 0   ;;  %s2158_s25 = smov 0  }
  0x13   :  { %s2160_s26 = smov 0   ;;  %s2162_s27 = smov 0  }
  0x14   :  { %s2164_s28 = smov 0   ;;  %s2166_s29 = smov 0  }
  0x15   :  { %s2168_s30 = smov 0   ;;  %s2170_s8 = smov 0  }
  0x16   :  { %s2172_s9 = smov 0   ;;  %s2174_s10 = smov 0  }
  0x17 LB: > { %2799 = sst [smem:[#allocation23_spill]] %s2082_s29  ;;  %s2207_s11 = sadd.s32 4294967295, %s2098_s10   ;;  %s2098_s10 = sphi %s2174_s10, %s2856_s10   ;;  %s2094_s9 = sphi %s2172_s9, %s2848_s9   ;;  %s2090_s8 = sphi %s2170_s8, %s2855_s8   ;;  %s2086_s30 = sphi %s2168_s30, %s2854_s30   ;;  %s2082_s29 = sphi %s2166_s29, %s2846_s29   ;;  %s2078_s28 = sphi %s2164_s28, %s2853_s28   ;;  %s2074_s27 = sphi %s2162_s27, %s2852_s27   ;;  %s2070_s26 = sphi %s2160_s26, %s2851_s26   ;;  %s2066_s25 = sphi %s2158_s25, %s2850_s25   ;;  %s2062_s24 = sphi %s2156_s24, %s2849_s24  }
  0x18   : > { %2800 = sst [smem:[#allocation24_spill]] %s2094_s9  ;;  %s2210_s12 = sadd.s32 1, %s2098_s10  }
  0x19   : > { %p2777_p0 = scmp.eq.s32.totalorder %s2098_s10, 0  ;;  %p65_p1 = scmp.gt.s32.totalorder %s2207_s11, 0 }
  0x1a   : > { %s1393_s13 = sadd.s32 4294967295, %s2210_s12  ;;  %s73_s14 = sadd.s32 1, %s2082_s29 }
  0x1b   : > { %s66_s15 = scalar_select %p65_p1, %s2207_s11, 0 }
  0x1c   : > { %p68_p2 = scmp.gt.s32.totalorder %s1393_s13, 0  ;;  %p80_p3 = scmp.ne.s32.totalorder %s2082_s29, %s2078_s28 }
  0x1d   : > { %p86_p4 = scmp.ne.s32.totalorder %s2078_s28, %s2074_s27  ;;  %p2776_p7 = scmp.lt.s32.totalorder %s2098_s10, 4 }
  0x1e   : > { %s2858_s13 = smov (!%p68_p2, %s1393_s13), 0  ;;  %p2223_p5 = por %p80_p3, %p2777_p0 }
  0x1f   : > { %s70_s17 = ssub.s32 %s66_s15, %s2858_s13  ;;  %s300_s19 = sand.u32 1, %s2098_s10  }
  0x20   : > { %p71_p6 = scmp.eq.s32.totalorder %s70_s17, 0  ;;  %s302_s20 = sand.u32 1, %s2082_s29  }
  0x21   : > { %s1399_s21 = sshll.u32 %s302_s20, 3  ;;  %s1401_s22 = sshll.u32 %s66_s15, 6 }
  0x22   : > { %s2229_s18 = scalar_select %p71_p6, %s2082_s29, %s73_s14  }
  0x23   : > { %s2803_s1 = sld [smem:[#allocation29_spill]]  ;;  %s304_s4 = scalar_lea.vmem [#allocation5], %s1399_s21 }
  0x24   : > { %2802 = sst [smem:[#allocation25_spill]] %s2229_s18  ;;  %s313_s5 = sshll.u32 %s304_s4, 4  ;;  %s2238_s5 = int_to_ptr.vmem [resolvable:$true] %s313_s5 }
  0x25   : > { %p2244_p8 = pnand %p2776_p7, %p2223_p5  ;;  %s2248_s14 = scalar_lea.sflag [#allocation6], %s300_s19 }
  0x27   : > { %p1764_p10 = pneg %p2244_p8 }
  0x29   : > { %s2236_s6 = scalar_lea.hbm %s2803_s1, %s1401_s22  ;;  %s1767_s16 = scalar_lea.hbm %s2803_s1, 512 }
  0x2a   : > { %s1762_s7 = scalar_lea.hbm %s2236_s6, 128  ;;  %p1768_p13 = scmp.lt.u32.totalorder %s2236_s6, %s2803_s1 }
  0x2b   : > { %p1763_p9 = scmp.ne.s32.totalorder %s2236_s6, %s1762_s7  ;;  %p1769_p1 = scmp.lt.u32.totalorder %s1767_s16, %s1762_s7 }
  0x2c   : > { %p1771_p3 = scmp.lt.u32.totalorder %s1762_s7, %s2236_s6 }
  0x2d   : > { %p1765_p11 = pnand %p1764_p10, %p1763_p9  ;;  %p1770_p2 = por %p1769_p1, %p1768_p13 }
  0x2f   : > { %p1766_p12 = pneg %p1765_p11  ;;  %p1772_p5 = por %p1771_p3, %p1770_p2 }
  0x31   : > { %p1773_p6 = pnand %p1772_p5, %p1766_p12 }
  0x33   : > { %1776 = shalt.err (!%p1773_p6)
}
  0x34   : > { %s1777_s19 = scalar_lea.vmem %s2238_s5, 128  ;;  %s2100_s21 = smov [#allocation5]  }
  0x35   : > { %p1778_p9 = scmp.ne.s32.totalorder %s2238_s5, %s1777_s19  ;;  %s1782_s22 = sshll.u32 %s2100_s21, 4  ;;  %s1783_s22 = int_to_ptr.vmem [resolvable:$false] %s1782_s22 }
  0x36   : > { %s1784_s23 = scalar_lea.vmem %s1783_s22, 256  ;;  %p1785_p0 = scmp.lt.s32.totalorder %s2238_s5, %s1783_s22 }
  0x37   : > { %p1780_p11 = pnand %p1778_p9, %p1764_p10  ;;  %p1786_p13 = scmp.lt.s32.totalorder %s1784_s23, %s1777_s19 }
  0x39   : > { %p1781_p7 = pneg %p1780_p11  ;;  %p1787_p1 = por %p1786_p13, %p1785_p0 }
  0x3b   : > { %p1788_p2 = pnand %p1787_p1, %p1781_p7 }
  0x3d   : > { %1791 = shalt.err (!%p1788_p2)
}
  0x3e   : > { %s2778_s7 = smov 256   ;;  %s2780_s4 = smov 64  }
  0x3f   : > { %s2786_s15 = smov 4   ;;  %p2782_p0 = scmp.eq.s32.totalorder %s2207_s11, 0 }
  0x40   : > { %1610 = dma.hbm_to_vmem [thread:$0]  (!%p2244_p8), %s2236_s6, 128, %s2238_s5, %s2248_s14, %s2778_s7, %s2780_s4, %s2786_s15  }
  0x41   : > { %p118_p7 = scmp.ne.s32.totalorder %s2066_s25, %s2062_s24  ;;  %p1394_p10 = scmp.ge.s32.totalorder %s2098_s10, 1 }
  0x42   : > { %p2288_p12 = por %p86_p4, %p2782_p0  ;;  %p254_p3 = scmp.lt.s32.totalorder %s2098_s10, 5 }
  0x43   : > { %p2295_p5 = por %p118_p7, %p2782_p0  ;;  %s2104_s5 = smov [#allocation8]  }
  0x44   : > { %s2805_s16 = scalar_select %p2288_p12, 1, 0 }
  0x45   : > { %s2806_s17 = scalar_select %p2295_p5, 1, 0 }
  0x46   : > { %p2299_p6 = pnand %p1394_p10, %p254_p3  ;;  %s266_s6 = sshll.u32 %s2104_s5, 4  ;;  %s267_s6 = int_to_ptr.vmem [resolvable:$true] %s266_s6 }
  0x47   : > { %s38_s20 = ssub.s32 %s2098_s10, %s2210_s12  ;;  %s2809_s3 = sld [smem:[#allocation30_spill]] }
  0x48   : > { %s2807_s13 = scalar_select %p2299_p6, 1, 0 }
  0x49   : > { %p1600_p8 = pneg %p2299_p6 }
  0x4b   : > { %p2307_p4 = pnand %p1600_p8, %p2782_p0 }
  0x4d   : > { %s1792_s22 = scalar_lea.hbm %s2809_s3, 5120  ;;  %p1794_p11 = pneg %p2307_p4 }
  0x4e   : > { %p1793_p9 = scmp.ne.s32.totalorder %s2809_s3, %s1792_s22  ;;  %p1799_p2 = scmp.lt.u32.totalorder %s1792_s22, %s2809_s3 }
  0x50   : > { %p1795_p13 = pnand %p1794_p11, %p1793_p9 }
  0x52   : > { %p1796_p1 = pneg %p1795_p13 }
  0x54   : > { %p1801_p7 = pnand %p1799_p2, %p1796_p1 }
  0x56   : > { %1804 = shalt.err (!%p1801_p7)
}
  0x57   : > { %s1805_s27 = scalar_lea.vmem %s267_s6, 5120  ;;  %p1813_p0 = scmp.lt.s32.totalorder %s267_s6, %s267_s6 }
  0x58   : > { %p1806_p10 = scmp.ne.s32.totalorder %s267_s6, %s1805_s27  ;;  %p1814_p5 = scmp.lt.s32.totalorder %s1805_s27, %s1805_s27 }
  0x5a   : > { %p1808_p3 = pnand %p1806_p10, %p1794_p11  ;;  %p1815_p12 = por %p1814_p5, %p1813_p0 }
  0x5c   : > { %p1809_p8 = pneg %p1808_p3 }
  0x5e   : > { %p1816_p6 = pnand %p1815_p12, %p1809_p8 }
  0x60   : > { %1819 = shalt.err (!%p1816_p6)
}
  0x61   : > { %s2810_s7 = smov 64   ;;  %p39_p0 = scmp.eq.s32.totalorder %s38_s20, 0 }
  0x62   : > { %1603 = dma.hbm_to_vmem [thread:$0]  (!%p2307_p4), %s2809_s3, 5120, %s267_s6, [#allocation9], %s2810_s7, %s2810_s7, %s2786_s15  }
  0x63   : > { %s41_s4 = sadd.s32 1, %s2094_s9  ;;  %p48_p12 = scmp.ne.s32.totalorder %s2094_s9, %s2090_s8 }
  0x64   : > { %p54_p5 = scmp.ne.s32.totalorder %s2090_s8, %s2086_s30  ;;  %p2812_p6 = scmp.eq.s32.totalorder %s2098_s10, 0 }
  0x65   : > { %s2339_s24 = scalar_select %p39_p0, %s2094_s9, %s41_s4  }
  0x66   : > { %p50_p9 = por %p2812_p6, %p48_p12  ;;  %p2813_p11 = scmp.eq.s32.totalorder %s2207_s11, 0 }
  0x67   : > { %2811 = sst [smem:[#allocation26_spill]] %s2339_s24  ;;  %p163_p1 = scmp.eq.s32.totalorder %s2207_s11, 3 }
  0x68   : > { %p2345_p13 = por %p2813_p11, %p54_p5  ;;  %s2815_s22 = sadd.s32 4294967294, %s2098_s10  }
  0x69   : > { %p169_p2 = scmp.eq.s32.totalorder %s2815_s22, 3  ;;  %s280_s23 = sand.u32 1, %s2094_s9  }
  0x6a   : > { %s1398_s5 = sshll.u32 %s2098_s10, 6  ;;  %p2354_p4 = por %p163_p1, %p48_p12 }
  0x6b   : > { %p2358_p7 = por %p169_p2, %p54_p5  ;;  %s1397_s19 = sshll.u32 %s280_s23, 3 }
  0x6c   : > { %s2816_s6 = scalar_select %p2354_p4, 1, 0 }
  0x6d   : > { %s2817_s20 = scalar_select %p2358_p7, 1, 0 }
  0x6e   : > { %s2819_s0 = sld [smem:[#allocation28_spill]]  ;;  %s284_s22 = scalar_lea.vmem [#allocation2], %s1397_s19 }
  0x6f   : > { %2818 = sst [smem:[#allocation27_spill]] %s2817_s20  ;;  %s290_s1 = sshll.u32 %s284_s22, 4  ;;  %s2373_s1 = int_to_ptr.vmem [resolvable:$true] %s290_s1 }
  0x70   : > { %p2820_p10 = scmp.lt.s32.totalorder %s2098_s10, 4  ;;  %s2375_s24 = scalar_lea.sflag [#allocation3], %s280_s23 }
  0x72   : > { %p2369_p3 = pnand %p2820_p10, %p50_p9 }
  0x74   : > { %s2365_s15 = scalar_lea.hbm %s2819_s0, %s1398_s5  ;;  %p1822_p0 = pneg %p2369_p3 }
  0x75   : > { %s1820_s21 = scalar_lea.hbm %s2365_s15, 128  ;;  %s1825_s4 = scalar_lea.hbm %s2819_s0, 512 }
  0x76   : > { %p1821_p8 = scmp.ne.s32.totalorder %s2365_s15, %s1820_s21  ;;  %p1826_p6 = scmp.lt.u32.totalorder %s2365_s15, %s2819_s0 }
  0x77   : > { %p1827_p9 = scmp.lt.u32.totalorder %s1825_s4, %s1820_s21  ;;  %p1829_p1 = scmp.lt.u32.totalorder %s1820_s21, %s2365_s15 }
  0x78   : > { %p1823_p12 = pnand %p1822_p0, %p1821_p8 }
  0x79   : > { %p1828_p11 = por %p1827_p9, %p1826_p6 }
  0x7a   : > { %p1824_p5 = pneg %p1823_p12 }
  0x7b   : > { %p1830_p2 = por %p1829_p1, %p1828_p11 }
  0x7d   : > { %p1831_p10 = pnand %p1830_p2, %p1824_p5 }
  0x7f   : > { %1834 = shalt.err (!%p1831_p10)
}
  0x80   : > { %s1835_s23 = scalar_lea.vmem %s2373_s1, 128  ;;  %s2105_s5 = smov [#allocation2]  }
  0x81   : > { %p1836_p8 = scmp.ne.s32.totalorder %s2373_s1, %s1835_s23  ;;  %s1840_s19 = sshll.u32 %s2105_s5, 4  ;;  %s1841_s19 = int_to_ptr.vmem [resolvable:$false] %s1840_s19 }
  0x82   : > { %s1842_s9 = scalar_lea.vmem %s1841_s19, 256  ;;  %p1843_p4 = scmp.lt.s32.totalorder %s2373_s1, %s1841_s19 }
  0x83   : > { %p1838_p12 = pnand %p1836_p8, %p1822_p0  ;;  %p1844_p6 = scmp.lt.s32.totalorder %s1842_s9, %s1835_s23 }
  0x85   : > { %p1839_p7 = pneg %p1838_p12  ;;  %p1845_p9 = por %p1844_p6, %p1843_p4 }
  0x87   : > { %p1846_p11 = pnand %p1845_p9, %p1839_p7 }
  0x89   : > { %1849 = shalt.err (!%p1846_p11)
}
  0x8a   : > { %s2822_s21 = smov 4   ;;  %s2823_s4 = smov 256  }
  0x8b   : > { %1607 = dma.hbm_to_vmem [thread:$0]  (!%p2369_p3), %s2365_s15, 128, %s2373_s1, %s2375_s24, %s2823_s4, %s2810_s7, %s2822_s21  }
  0x8c   : > { %p97_p4 = scmp.lt.s32.totalorder %s2210_s12, 3  ;;  %s99_s22 = sadd.s32 1, %s2210_s12 }
  0x8d   : > { %p100_p7 = scmp.lt.s32.totalorder %s99_s22, 3  ;;  %s105_s3 = sadd.s32 1, %s2070_s26 }
  0x8e   : > { %s98_s23 = scalar_select %p97_p4, %s2210_s12, 3 }
  0x8f   : > { %s2860_s22 = smov (!%p100_p7, %s99_s22), 3  ;;  %p112_p0 = scmp.ne.s32.totalorder %s2070_s26, %s2066_s25 }
  0x90   : > { %s325_s5 = sand.u32 1, %s2070_s26   ;;  %s102_s19 = ssub.s32 %s98_s23, %s2860_s22 }
  0x91   : > { %s1402_s9 = sshll.u32 %s325_s5, 3  ;;  %p103_p5 = scmp.eq.s32.totalorder %s102_s19, 0 }
  0x92   : > { %p2824_p1 = scmp.eq.s32.totalorder %s2098_s10, 0  ;;  %s1403_s0 = sshll.u32 %s98_s23, 6 }
  0x93   : > { %s2416_s18 = scalar_select %p103_p5, %s2070_s26, %s105_s3  }
  0x94   : > { %p114_p2 = por %p112_p0, %p2824_p1  ;;  %s2421_s1 = scalar_lea.hbm %s2766_s2, %s1403_s0 }
  0x95   : > { %s327_s15 = scalar_lea.vmem [#allocation7], %s1402_s9  ;;  %p2825_p3 = scmp.lt.s32.totalorder %s2098_s10, 4 }
  0x96   : > { %s336_s24 = sshll.u32 %s327_s15, 4  ;;  %s1850_s3 = scalar_lea.hbm %s2421_s1, 128  ;;  %s2423_s24 = int_to_ptr.vmem [resolvable:$true] %s336_s24 }
  0x97   : > { %p2427_p10 = pnand %p2825_p3, %p114_p2  ;;  %p1851_p8 = scmp.ne.s32.totalorder %s2421_s1, %s1850_s3 }
  0x98   : > { %s1855_s20 = scalar_lea.hbm %s2766_s2, 512  ;;  %p1856_p11 = scmp.lt.u32.totalorder %s2421_s1, %s2766_s2 }
  0x99   : > { %p1852_p12 = pneg %p2427_p10  ;;  %p1857_p4 = scmp.lt.u32.totalorder %s1855_s20, %s1850_s3 }
  0x9a   : > { %p1859_p0 = scmp.lt.u32.totalorder %s1850_s3, %s2421_s1 }
  0x9b   : > { %p1853_p6 = pnand %p1852_p12, %p1851_p8  ;;  %p1858_p7 = por %p1857_p4, %p1856_p11 }
  0x9d   : > { %p1854_p9 = pneg %p1853_p6  ;;  %p1860_p5 = por %p1859_p0, %p1858_p7 }
  0x9f   : > { %p1861_p1 = pnand %p1860_p5, %p1854_p9 }
  0xa1   : > { %1864 = shalt.err (!%p1861_p1)
}
  0xa2   : > { %s1865_s19 = scalar_lea.vmem %s2423_s24, 128  ;;  %s2106_s9 = smov [#allocation7]  }
  0xa3   : > { %p1866_p2 = scmp.ne.s32.totalorder %s2423_s24, %s1865_s19  ;;  %s1870_s15 = sshll.u32 %s2106_s9, 4  ;;  %s1871_s15 = int_to_ptr.vmem [resolvable:$false] %s1870_s15 }
  0xa4   : > { %s1872_s0 = scalar_lea.vmem %s1871_s15, 256  ;;  %p1873_p6 = scmp.lt.s32.totalorder %s2423_s24, %s1871_s15 }
  0xa5   : > { %p1868_p3 = pnand %p1866_p2, %p1852_p12  ;;  %p1874_p11 = scmp.lt.s32.totalorder %s1872_s0, %s1865_s19 }
  0xa7   : > { %p1869_p8 = pneg %p1868_p3  ;;  %p1875_p4 = por %p1874_p11, %p1873_p6 }
  0xa9   : > { %p1876_p7 = pnand %p1875_p4, %p1869_p8 }
  0xab   : > { %1879 = shalt.err (!%p1876_p7)
}
  0xac   : > { %1613 = dma.hbm_to_vmem [thread:$0]  (!%p2427_p10), %s2421_s1, 128, %s2423_s24, %s2248_s14, %s2823_s4, %s2810_s7, %s2822_s21  }
  0xad   : > { %p2827_p12 = scmp.ne.s32.totalorder %s2807_s13, 0 }
  0xae   : > { %s2463_s3 = sand.u32 (!%p2827_p12), 1, %s2090_s8  }
  0xaf   : > { %348 = sbr.rel (%p2827_p12) target bundleno = 575 (0x23f), region = 36  ;;  %s2466_s29 = sshll.u32 (!%p2827_p12), %s2463_s3, 3 }
  0xb0   : > { %s351_s22 = scalar_lea.sflag (!%p2827_p12), [#allocation3], %s2463_s3  ;;  %s354_s20 = scalar_lea.vmem (!%p2827_p12), [#allocation2], %s2466_s29 }
  0xb6   : > { %2033 = dma.done.wait (%p2345_p13), %s351_s22, 128  }
  0xb7   : > { %2035 = vsyncadd (%p2345_p13), %s351_s22, 4294967168  ;;  %s359_s14 = sand.u32 1, %s2207_s11   ;;  %s361_s13 = sand.u32 1, %s2078_s28  }
  0xb8   : > { %s2476_s7 = sshll.u32 %s361_s13, 3  ;;  %s360_s21 = scalar_lea.sflag [#allocation6], %s359_s14 }
  0xb9   : > { %s363_s4 = scalar_lea.vmem [#allocation5], %s2476_s7  ;;  %p2828_p10 = scmp.ne.s32.totalorder %s2805_s16, 0 }
  0xbb   : > { %2037 = dma.done.wait (%p2828_p10), %s360_s21, 128  }
  0xbc   : > { %2039 = vsyncadd (%p2828_p10), %s360_s21, 4294967168  ;;  %s370_s27 = sand.u32 1, %s2066_s25   ;;  %p2829_p13 = scmp.ne.s32.totalorder %s2806_s17, 0 }
  0xbd   : > { %s2486_s1 = sshll.u32 %s370_s27, 3 }
  0xbe   : > { %s372_s24 = scalar_lea.vmem [#allocation7], %s2486_s1 }
  0xbf   : > { %2041 = dma.done.wait (%p2829_p13), %s360_s21, 128  }
  0xc0   : > { %2043 = vsyncadd (%p2829_p13), %s360_s21, 4294967168  ;;  %p2830_p9 = scmp.eq.s32.totalorder %s2207_s11, 0 }
  0xc2   : > { %2045 = dma.done.wait (%p2830_p9), [#allocation9], 5120   ;;  %p2831_p0 = pmov %p2830_p9 }
  0xc3   : > { %v1720_v0 = vld [vmem:[#allocation8 + $0x40] sm:$0xff]   ;;  %v1724_v4 = vld [vmem:[#allocation8 + $0x48] sm:$0xff]   ;;  %v1728_v8 = vld [vmem:[#allocation8 + $0x50] sm:$0xff]   ;;  %s1413_s16 = sshll.u32 %s2207_s11, 3  ;;  %v461_v13 = vlaneseq  ;;  %vm452_vm0 = vcmask 1043456   ;;  %v2107_v44 = vmov 0.0  }
  0xc4   : > { %2047 = vsyncadd (%p2831_p0), [#allocation9], 4294962176  ;;  %v1721_v1 = vld [vmem:[#allocation8 + $0xc0] sm:$0xff]   ;;  %1509 = vmatprep.subr.bf16.mxu0 %v1720_v0  ;;  %v1725_v5 = vld [vmem:[#allocation8 + $0xc8] sm:$0xff]   ;;  %s1416_s17 = sadd.s32 4294967288, %s1413_s16  ;;  %vm577_vm10 = vcmask 1040384  }
  0xc5   : > { %v1722_v2 = vld [vmem:[#allocation8] sm:$0xff]   ;;  %1531 = vmatprep.subr.bf16.mxu1 %v1721_v1  ;;  %v1726_v6 = vld [vmem:[#allocation8 + $0x8] sm:$0xff]   ;;  %v1729_v9 = vld [vmem:[#allocation8 + $0xd0] sm:$0xff]   ;;  %v2500_v18 = vshrl.u32 %v461_v13, 7  ;;  %v466_v22 = vstv %s1416_s17  ;;  %vm578_vm11 = vcmask 1044484   ;;  %vm2108_vm14 = vmmov 0  }
  0xc6   : > { %v1723_v3 = vld [vmem:[#allocation8 + $0x80] sm:$0xff]   ;;  %1510 = vmatpush3.bf16.msra.mxu0 %v1722_v2  ;;  %v1727_v7 = vld [vmem:[#allocation8 + $0x88] sm:$0xff]   ;;  %v1730_v10 = vld [vmem:[#allocation8 + $0x10] sm:$0xff]   ;;  %vm519_vm12 = vsmask.f32 6400  ;;  %vm538_vm15 = vcmask 1045504  }
  0xc7   : > { %1532 = vmatpush3.bf16.msra.mxu1 %v1723_v3  ;;  %1511 = vmatprep.subr.bf16.mxu0 %v1724_v4  ;;  %v1731_v11 = vld [vmem:[#allocation8 + $0x90] sm:$0xff]   ;;  %v1732_v12 = vld [vmem:[#allocation8 + $0x58] sm:$0xff]   ;;  %v1736_v17 = vld [vmem:[#allocation8 + $0x60] sm:$0xff]   ;;  %v463_v24 = vadd.s32 8, %v2500_v18  ;;  %v467_v27 = vadd.s32 %v466_v22, %v2500_v18  ;;  %v464_v28 = vadd.s32 16, %v2500_v18  ;;  %s410_s23 = scalar_lea.vmem [#allocation10], %s2466_s29 }
  0xc8   : > { %1533 = vmatprep.subr.bf16.mxu1 %v1725_v5  ;;  %v1733_v14 = vld [vmem:[#allocation8 + $0xd8] sm:$0xff]   ;;  %v1737_v19 = vld [vmem:[#allocation8 + $0xe0] sm:$0xff]   ;;  %v1740_v23 = vld [vmem:[#allocation8 + $0x68] sm:$0xff]   ;;  %s1129_s5 = sshll.u32 %s410_s23, 4  ;;  %s417_s19 = scalar_lea.vmem [#allocation11], %s2466_s29  ;;  %s2587_s5 = int_to_ptr.vmem [resolvable:$true] %s1129_s5 }
  0xc9   : > { %v1734_v15 = vld [vmem:[#allocation8 + $0x18] sm:$0xff]   ;;  %v1738_v20 = vld [vmem:[#allocation8 + $0x20] sm:$0xff]   ;;  %v1741_v25 = vld [vmem:[#allocation8 + $0xe8] sm:$0xff]   ;;  %v468_v31 = vadd.s32 %v466_v22, %v463_v24  ;;  %vm470_vm1 = vcmp.ge.s32.totalorder %v467_v27, 0  ;;  %v469_v34 = vadd.s32 %v466_v22, %v464_v28  ;;  %vm473_vm2 = vcmp.lt.s32.totalorder %v467_v27, 30  ;;  %s1144_s9 = sshll.u32 %s417_s19, 4  ;;  %s2589_s9 = int_to_ptr.vmem [resolvable:$true] %s1144_s9 }
  0xca   : > { %1512 = vmatpush3.bf16.msra.mxu0 %v1726_v6  ;;  %v1735_v16 = vld [vmem:[#allocation8 + $0x98] sm:$0xff]   ;;  %v1739_v21 = vld [vmem:[#allocation8 + $0xa0] sm:$0xff]   ;;  %v1742_v26 = vld [vmem:[#allocation8 + $0x28] sm:$0xff]   ;;  %s1484_s15 = sshll.u32 %s2207_s11, 6  ;;  %s424_s0 = scalar_lea.vmem [#allocation13], %s2466_s29 }
  0xcb   : > { %1534 = vmatpush3.bf16.msra.mxu1 %v1727_v7  ;;  %1513 = vmatprep.subr.bf16.mxu0 %v1728_v8  ;;  %v1743_v29 = vld [vmem:[#allocation8 + $0xa8] sm:$0xff]   ;;  %v1744_v30 = vld [vmem:[#allocation8 + $0x70] sm:$0xff]   ;;  %v1748_v36 = vld [vmem:[#allocation8 + $0x78] sm:$0xff]   ;;  %vm471_vm3 = vcmp.ge.s32.totalorder %v468_v31, 0  ;;  %vm474_vm4 = vcmp.lt.s32.totalorder %v468_v31, 30  ;;  %vm472_vm5 = vcmp.ge.s32.totalorder %v469_v34, 0 }
  0xcc   : > { %1535 = vmatprep.subr.bf16.mxu1 %v1729_v9  ;;  %v1745_v32 = vld [vmem:[#allocation8 + $0xf0] sm:$0xff]   ;;  %v1749_v37 = vld [vmem:[#allocation8 + $0xf8] sm:$0xff]   ;;  %vm475_vm6 = vcmp.lt.s32.totalorder %v469_v34, 30  ;;  %v440_v40 = vld [vmem:[%s363_s4] sm:$0xf]  ;;  %s1159_s22 = sshll.u32 %s424_s0, 4  ;;  %s2605_s22 = int_to_ptr.vmem [resolvable:$true] %s1159_s22 }
  0xcd   : > { %v1746_v33 = vld [vmem:[#allocation8 + $0x30] sm:$0xff]   ;;  %v1750_v38 = vld [vmem:[#allocation8 + $0x38] sm:$0xff]   ;;  %v441_v41 = vld [vmem:[%s363_s4 + $0x4] sm:$0xf]  ;;  %s2836_s7 = sld [smem:[#allocation32_spill]]  ;;  %s2837_s1 = sld [smem:[#allocation31_spill]] }
  0xce   : > { %1514 = vmatpush3.bf16.msra.mxu0 %v1730_v10  ;;  %v1747_v35 = vld [vmem:[#allocation8 + $0xb0] sm:$0xff]   ;;  %v1751_v39 = vld [vmem:[#allocation8 + $0xb8] sm:$0xff]   ;;  %vm2516_vm7 = vmand %vm470_vm1, %vm473_vm2  ;;  %s2838_s17 = sld [smem:[#allocation33_spill]]  ;;  %s2614_s13 = scalar_lea.sflag [#allocation12], %s359_s14 }
  0xcf   : > { %1536 = vmatpush3.bf16.msra.mxu1 %v1731_v11  ;;  %1515 = vmatprep.subr.bf16.mxu0 %v1732_v12  ;;  %v1752_v42 = vld [vmem:[%s354_s20] ss:$0 sps:$4 sm:$0xff]   ;;  %v1753_v43 = vld [vmem:[%s354_s20 + $0x4] ss:$0 sps:$4 sm:$0xff]   ;;  %vm477_vm8 = vmand %vm471_vm3, %vm474_vm4  ;;  %s1880_s4 = scalar_lea.vmem %s2589_s9, 128  ;;  %p2839_p1 = scmp.ne.s32.totalorder %s2816_s6, 0 }
  0xd0   : > { %1537 = vmatprep.subr.bf16.mxu1 %v1733_v14  ;;  %v1491_v46 = vld [vmem:[%s372_s24] sm:$0xff]   ;;  %v455_v47 = vsel %vm452_vm0, %v440_v40, %v1752_v42  ;;  %v459_v48 = vsel %vm452_vm0, %v441_v41, %v1753_v43  ;;  %vm478_vm9 = vmand %vm472_vm5, %vm475_vm6  ;;  %v1754_v43 = vld [vmem:[#allocation8 + $0x100] sm:$0xff]   ;;  %p1881_p5 = scmp.ne.s32.totalorder %s2589_s9, %s1880_s4 }
  0xd1   : > { %v1492_v49 = vunpack.c.l.bf16 %v1491_v46  ;;  %v1493_v50 = vunpack.c.h.bf16 %v1491_v46  ;;  %v479_v51 = vunpack.c.l.bf16 %v455_v47  ;;  %v480_v52 = vunpack.c.h.bf16 %v455_v47  ;;  %vm2554_vm13 = vmor %vm577_vm10, %vm578_vm11 }
  0xd2   : > { %1516 = vmatpush3.bf16.msra.mxu0 %v1734_v15  ;;  %v482_v53 = vunpack.c.l.bf16 %v459_v48  ;;  %v483_v54 = vunpack.c.h.bf16 %v459_v48  ;;  %p1882_p2 = pnand %p1881_p5, %p2839_p1 }
  0xd3   : > { %1538 = vmatpush3.bf16.msra.mxu1 %v1735_v16  ;;  %1517 = vmatprep.subr.bf16.mxu0 %v1736_v17  ;;  %v493_v55 = vsel %vm478_vm9, %v1492_v49, 0.0  ;;  %v496_v56 = vsel %vm478_vm9, %v1493_v50, 0.0  ;;  %v491_v57 = vsel %vm2516_vm7, %v479_v51, 0.0  ;;  %v492_v58 = vsel %vm477_vm8, %v480_v52, 0.0  ;;  %v1755_v51 = vld [vmem:[#allocation8 + $0x108] sm:$0xff]   ;;  %v1756_v52 = vld [vmem:[#allocation8 + $0x110] sm:$0xff]   ;;  %s2596_s21 = scalar_lea.hbm %s2836_s7, %s1484_s15  ;;  %s2601_s24 = scalar_lea.hbm %s2837_s1, %s1484_s15 }
  0xd4   : > { %1539 = vmatprep.subr.bf16.mxu1 %v1737_v19  ;;  %v494_v59 = vsel %vm2516_vm7, %v482_v53, 0.0  ;;  %v495_v60 = vsel %vm477_vm8, %v483_v54, 0.0  ;;  %v2532_v61 = vpack.c.bf16 %v492_v58, %v491_v57  ;;  %v2536_v63 = vpack.c.bf16 %v493_v55, %v493_v55  ;;  %v1757_v53 = vld [vmem:[#allocation8 + $0x118] sm:$0xff]   ;;  %v1758_v58 = vld [vmem:[#allocation8 + $0x120] sm:$0xff]   ;;  %s2610_s20 = scalar_lea.hbm %s2838_s17, %s1484_s15  ;;  %p1883_p3 = pneg %p1882_p2 }
  0xd5   : > { %v2534_v62 = vpack.c.bf16 %v495_v60, %v494_v59  ;;  %v2538_v0 = vpack.c.bf16 %v496_v56, %v496_v56 }
  0xd6   : > { %1518 = vmatpush3.bf16.msra.mxu0 %v1738_v20  ;;  %v502_v1 = vshrl.u32 %v2532_v61, 16  ;;  %v504_v2 = vshll.u32 %v2532_v61, 16  ;;  %v524_v5 = vshll.u32 %v2536_v63, 16  ;;  %v517_v17 = vrot.slane %v2532_v61, 1 }
  0xd7   : > { %1540 = vmatpush3.bf16.msra.mxu1 %v1739_v21  ;;  %1519 = vmatprep.subr.bf16.mxu0 %v1740_v23  ;;  %v509_v3 = vshrl.u32 %v2534_v62, 16  ;;  %v511_v4 = vshll.u32 %v2534_v62, 16  ;;  %v532_v6 = vshll.u32 %v2538_v0, 16  ;;  %v518_v19 = vrot.slane %v2534_v62, 1 }
  0xd8   : > { %1541 = vmatprep.subr.bf16.mxu1 %v1741_v25  ;;  %v506_v7 = vrot.slane %v504_v2, 1  ;;  %v520_v9 = vrot.slane %v502_v1, 1  ;;  %v521_v11 = vrot.slane %v504_v2, 2  ;;  %v526_v12 = vrot.slane %v524_v5, 2 }
  0xd9   : > { %v513_v8 = vrot.slane %v511_v4, 1  ;;  %v528_v10 = vrot.slane %v509_v3, 1  ;;  %v529_v13 = vrot.slane %v511_v4, 2  ;;  %v534_v14 = vrot.slane %v532_v6, 2 }
  0xda   : > { %1520 = vmatpush3.bf16.msra.mxu0 %v1742_v26  ;;  %v507_v15 = vor.u32 %v506_v7, %v502_v1  ;;  %v522_v20 = vor.u32 %v521_v11, %v520_v9  ;;  %v540_v54 = vrot.slane %v2536_v63, 2  ;;  %v543_v55 = vrot.slane %v2538_v0, 2  ;;  %v1759_v1 = vld [vmem:[#allocation8 + $0x128] sm:$0xff]   ;;  %v1760_v0 = vld [vmem:[#allocation8 + $0x130] sm:$0xff]   ;;  %v1761_v7 = vld [vmem:[#allocation8 + $0x138] sm:$0xff]  }
  0xdb   : > { %1542 = vmatpush3.bf16.msra.mxu1 %v1743_v29  ;;  %1521 = vmatprep.subr.bf16.mxu0 %v1744_v30  ;;  %v514_v16 = vor.u32 %v513_v8, %v509_v3  ;;  %v530_v21 = vor.u32 %v529_v13, %v528_v10  ;;  %v539_v56 = vrot.slane %v2532_v61, 2  ;;  %v542_v57 = vrot.slane %v2534_v62, 2 }
  0xdc   : > { %1543 = vmatprep.subr.bf16.mxu1 %v1745_v32  ;;  %v1417_v22 = vcombine.low %v2532_v61, %v507_v15  ;;  %v1420_v23 = vcombine.high %v2532_v61, %v507_v15  ;;  %v527_v27 = vsel %vm519_vm12, %v522_v20, %v526_v12 }
  0xdd   : > { %v1423_v24 = vcombine.low %v2534_v62, %v514_v16  ;;  %v1426_v25 = vcombine.high %v2534_v62, %v514_v16  ;;  %v535_v28 = vsel %vm519_vm12, %v530_v21, %v534_v14  ;;  %v1421_v34 = vcombine.high %v517_v17, %v527_v27 }
  0xde   : > { %1522 = vmatpush3.bf16.msra.mxu0 %v1746_v33  ;;  %v1429_v29 = vrot.slane %v1417_v22, 11  ;;  %v582_v30 = vrot.slane %v1420_v23, 7  ;;  %v1418_v33 = vcombine.low %v517_v17, %v527_v27  ;;  %v541_v59 = vsel %vm538_vm15, %v539_v56, %v540_v54 }
  0xdf   : > { %1544 = vmatpush3.bf16.msra.mxu1 %v1747_v35  ;;  %1523 = vmatprep.subr.bf16.mxu0 %v1748_v36  ;;  %v1432_v31 = vrot.slane %v1423_v24, 11  ;;  %v594_v32 = vrot.slane %v1426_v25, 7  ;;  %v1424_v35 = vcombine.low %v518_v19, %v535_v28  ;;  %v1427_v36 = vcombine.high %v518_v19, %v535_v28 }
  0xe0   : > { %1545 = vmatprep.subr.bf16.mxu1 %v1749_v37  ;;  %v583_v37 = vsel %vm2554_vm13, %v1429_v29, %v582_v30  ;;  %v1430_v41 = vrot.slane %v1418_v33, 11  ;;  %v586_v42 = vrot.slane %v1421_v34, 7  ;;  %v544_v60 = vsel %vm538_vm15, %v542_v57, %v543_v55 }
  0xe1   : > { %v1433_v45 = vrot.slane %v1424_v35, 11  ;;  %v598_v46 = vrot.slane %v1427_v36, 7  ;;  %v1419_v2 = vcombine.low %v541_v59, %v541_v59  ;;  %v1422_v3 = vcombine.high %v541_v59, %v541_v59 }
  0xe2   : > { %1524 = vmatpush3.bf16.msra.mxu0 %v1750_v38  ;;  %v595_v38 = vsel %vm2554_vm13, %v1432_v31, %v594_v32  ;;  %v587_v47 = vsel %vm2554_vm13, %v1430_v41, %v586_v42  ;;  %v1425_v63 = vcombine.low %v544_v60, %v544_v60  ;;  %v1428_v4 = vcombine.high %v544_v60, %v544_v60 }
  0xe3   : > { %1546 = vmatpush3.bf16.msra.mxu1 %v1751_v39  ;;  %1562 = vmatprep.subr.bf16.mxu0 %v2107_v44  ;;  %v1435_v39 = vcombine.low %v583_v37, %v595_v38  ;;  %v1436_v40 = vcombine.high %v583_v37, %v595_v38  ;;  %v599_v48 = vsel %vm2554_vm13, %v1433_v45, %v598_v46  ;;  %v1431_v61 = vrot.slane %v1419_v2, 11 }
  0xe4   : > { %v1437_v49 = vcombine.low %v587_v47, %v599_v48  ;;  %v1438_v50 = vcombine.high %v587_v47, %v599_v48  ;;  %v590_v5 = vrot.slane %v1422_v3, 7  ;;  %v1434_v62 = vrot.slane %v1425_v63, 11 }
  0xe5   : > { %976 = vmatprep.mubr.bf16.mxu0 %v1436_v40  ;;  %v602_v6 = vrot.slane %v1428_v4, 7  ;;  %v1067_v25 = vstv %s1413_s16 }
  0xe6   : > { %977 = vmatmul.mubr.bf16.vlgmr.msra.gmra.mrb[0].mxu0 %v1435_v39  ;;  %1017 = vmatprep.mubr.bf16.mxu1 %v1438_v50  ;;  %v591_v8 = vsel %vm2554_vm13, %v1431_v61, %v590_v5  ;;  %v1068_v26 = vadd.s32 %v1067_v25, %v2500_v18 }
  0xe7   : > { %1563 = vmatpush3.bf16.msra.mxu0 %v1754_v43  ;;  %1578 = vmatprep.mubr.msk.bf16.mxu0 %vm2108_vm14, %v2107_v44  ;;  %v603_v9 = vsel %vm2554_vm13, %v1434_v62, %v602_v6 }
  0xe8   : > { %1564 = vmatprep.subr.bf16.mxu0 %v2107_v44  ;;  %1018 = vmatmul.mubr.bf16.vlgmr.msra.gmra.mrb[0].mxu1 %v1437_v49  ;;  %v1439_v10 = vcombine.low %v591_v8, %v603_v9  ;;  %vm1069_vm0 = vcmp.lt.s32.totalorder %v1068_v26, 30 }
  0xeb   : > { %1565 = vmatpush3.bf16.msra.mxu0 %v1755_v51 }
  0xec   : > { %1566 = vmatprep.subr.bf16.mxu0 %v2107_v44 }
  0xef   : > { %1567 = vmatpush3.bf16.msra.mxu0 %v1756_v52 }
  0xf0   : > { %1568 = vmatprep.subr.bf16.mxu0 %v2107_v44 }
  0xf3   : > { %1569 = vmatpush3.bf16.msra.mxu0 %v1757_v53 }
  0xf4   : > { %1570 = vmatprep.subr.bf16.mxu0 %v2107_v44 }
  0xf7   : > { %1571 = vmatpush3.bf16.msra.mxu0 %v1758_v58 }
  0xf8   : > { %1572 = vmatprep.subr.bf16.mxu0 %v2107_v44 }
  0xfb   : > { %1573 = vmatpush3.bf16.msra.mxu0 %v1759_v1 }
  0xfc   : > { %1574 = vmatprep.subr.bf16.mxu0 %v2107_v44 }
  0xff   : > { %1575 = vmatpush3.bf16.msra.mxu0 %v1760_v0 }
 0x100   : > { %1576 = vmatprep.subr.bf16.mxu0 %v2107_v44 }
 0x103   : > { %1577 = vmatpush3.bf16.msra.mxu0 %v1761_v7 }
 0x106   : > { %1579 = vmatmul.mubr.bf16.vlgmr.msra.gmra.mrb[4].mxu0 %v1439_v10 }
 0x1b9   : > { %v1525_v11 = vpop.f32.mrb[0].mxu0 }
 0x1ba   : > { %v1526_v12 = vpop.f32.mrb[1].mxu0 }
 0x1bb   : > { %v1527_v13 = vadd.f32 %v1526_v12, %v1525_v11  ;;  %v1528_v14 = vpop.f32.mrb[2].mxu0  ;;  %v1547_v16 = vpop.f32.mrb[0].mxu1 }
 0x1bc   : > { %v1529_v15 = vpop.f32.mrb[3].mxu0  ;;  %v1548_v19 = vpop.f32.mrb[1].mxu1 }
 0x1bd   : > { %v1530_v17 = vadd.f32 %v1529_v15, %v1528_v14  ;;  %v1549_v20 = vadd.f32 %v1548_v19, %v1547_v16  ;;  %v1550_v21 = vpop.f32.mrb[2].mxu1 }
 0x1be   : > { %v1551_v22 = vpop.f32.mrb[3].mxu1 }
 0x1bf   : > { %v1552_v23 = vadd.f32 %v1551_v22, %v1550_v21  ;;  %v1020_v24 = vadd.f32 %v1549_v20, %v1527_v13 }
 0x1c1   : > { %v1023_v44 = vadd.f32 %v1552_v23, %v1530_v17 }
 0x1d9   : > { %v1060_v27 = vpop.f32.mrb[4].mxu0 }
 0x1da   : > { %v1061_v28 = vadd.f32 %v1060_v27, %v1020_v24  ;;  %v1580_v29 = vpop.f32.mrb[5].mxu0 }
 0x1db   : > { %v1063_v30 = vpop.f32.mrb[6].mxu0 }
 0x1dc   : > { %v1072_v31 = vsel %vm1069_vm0, %v1061_v28, 0.0  ;;  %v1064_v32 = vadd.f32 %v1063_v30, %v1023_v44  ;;  %v1581_v33 = vpop.f32.mrb[7].mxu0 }
 0x1dd   : > { %v1089_v34 = vmul.f32 %v1072_v31, %v1072_v31 }
 0x1de   : > { %v1073_v18 = vsel %vm1069_vm0, %v1064_v32, 0.0 }
 0x1df   : > { %v1497_v35 = vpack.c.bf16 %v1073_v18, %v1072_v31  ;;  %v1082_v36 = vadd.f32 %v1073_v18, %v1072_v31  ;;  %v1090_v37 = vmul.f32 %v1073_v18, %v1073_v18 }
 0x1e1   : > { %1498 = vst [vmem:[%s410_s23] sm:$0xff] %v1497_v35   ;;  %1503 = vst [vmem:[%s417_s19] sm:$0xff] %v1497_v35   ;;  %v1083_v38 = vrot.slane %v1082_v36, 4  ;;  %v2603_v39 = vadd.f32 %v1090_v37, %v1089_v34  ;;  %s2109_s23 = smov [#allocation11]  }
 0x1e2   : > { %1508 = vst [vmem:[%s424_s0] sm:$0xff] %v1497_v35   ;;  %s1884_s19 = sshll.u32 %s2109_s23, 4  ;;  %s1885_s19 = int_to_ptr.vmem [resolvable:$false] %s1884_s19 }
 0x1e3   : > { %s1886_s0 = scalar_lea.vmem %s1885_s19, 256  ;;  %p1887_p8 = scmp.lt.s32.totalorder %s2589_s9, %s1885_s19 }
 0x1e4   : > { %p1888_p6 = scmp.lt.s32.totalorder %s1886_s0, %s1880_s4 }
 0x1e6   : > { %p1889_p11 = por %p1888_p6, %p1887_p8 }
 0x1e8   : > { %p1890_p4 = pnand %p1889_p11, %p1883_p3 }
 0x1ea   : > { %1893 = shalt.err (!%p1890_p4)
}
 0x1eb   : > { %s1894_s14 = scalar_lea.hbm %s2596_s21, 128  ;;  %s1898_s29 = scalar_lea.hbm %s2836_s7, 512 }
 0x1ec   : > { %p1895_p7 = scmp.ne.s32.totalorder %s2596_s21, %s1894_s14  ;;  %p1899_p13 = scmp.lt.u32.totalorder %s2596_s21, %s2836_s7 }
 0x1ed   : > { %p1900_p9 = scmp.lt.u32.totalorder %s1898_s29, %s1894_s14  ;;  %p1902_p5 = scmp.lt.u32.totalorder %s1894_s14, %s2596_s21 }
 0x1ee   : > { %p1896_p12 = pnand %p1895_p7, %p2839_p1 }
 0x1ef   : > { %p1901_p0 = por %p1900_p9, %p1899_p13 }
 0x1f0   : > { %p1897_p10 = pneg %p1896_p12 }
 0x1f1   : > { %p1903_p2 = por %p1902_p5, %p1901_p0 }
 0x1f3   : > { %p1904_p3 = pnand %p1903_p2, %p1897_p10 }
 0x1f5   : > { %1907 = shalt.err (!%p1904_p3)
}
 0x1f6   : > { %s2110_s4 = smov 64   ;;  %s2111_s19 = smov 256   ;;  %v1084_v40 = vadd.f32 %v1083_v38, %v1082_v36  ;;  %v1092_v41 = vrot.slane %v2603_v39, 4 }
 0x1f7   : > { %s2112_s0 = smov 4   ;;  %s1908_s15 = scalar_lea.vmem %s2587_s5, 128 }
 0x1f8   : > { %1593 = dma.vmem_to_hbm [thread:$0]  (%p2839_p1), %s2589_s9, 128, %s2596_s21, %s2614_s13, %s2110_s4, %s2111_s19, %s2112_s0  }
 0x1f9   : > { %p1909_p8 = scmp.ne.s32.totalorder %s2587_s5, %s1908_s15  ;;  %s2113_s27 = smov [#allocation10]  }
 0x1fa   : > { %s1912_s29 = sshll.u32 %s2113_s27, 4  ;;  %s1913_s29 = int_to_ptr.vmem [resolvable:$false] %s1912_s29 }
 0x1fb   : > { %p1910_p6 = pnand %p1909_p8, %p2839_p1  ;;  %s1914_s16 = scalar_lea.vmem %s1913_s29, 256 }
 0x1fc   : > { %p1915_p4 = scmp.lt.s32.totalorder %s2587_s5, %s1913_s29  ;;  %p1916_p7 = scmp.lt.s32.totalorder %s1914_s16, %s1908_s15 }
 0x1fd   : > { %p1911_p11 = pneg %p1910_p6 }
 0x1fe   : > { %p1917_p12 = por %p1916_p7, %p1915_p4 }
 0x200   : > { %p1918_p10 = pnand %p1917_p12, %p1911_p11 }
 0x202   : > { %1921 = shalt.err (!%p1918_p10)
}
 0x203   : > { %s1922_s9 = scalar_lea.hbm %s2601_s24, 128  ;;  %s1926_s27 = scalar_lea.hbm %s2837_s1, 512 }
 0x204   : > { %p1923_p13 = scmp.ne.s32.totalorder %s2601_s24, %s1922_s9  ;;  %p1927_p5 = scmp.lt.u32.totalorder %s2601_s24, %s2837_s1 }
 0x205   : > { %p1928_p2 = scmp.lt.u32.totalorder %s1926_s27, %s1922_s9  ;;  %p1930_p8 = scmp.lt.u32.totalorder %s1922_s9, %s2601_s24 }
 0x206   : > { %p1924_p9 = pnand %p1923_p13, %p2839_p1 }
 0x207   : > { %p1929_p3 = por %p1928_p2, %p1927_p5 }
 0x208   : > { %p1925_p0 = pneg %p1924_p9 }
 0x209   : > { %p1931_p6 = por %p1930_p8, %p1929_p3 }
 0x20b   : > { %p1932_p11 = pnand %p1931_p6, %p1925_p0 }
 0x20d   : > { %1935 = shalt.err (!%p1932_p11)
}
 0x20e   : > { %s2840_s15 = scalar_lea.sflag [#allocation4], %s2463_s3  ;;  %s1936_s14 = scalar_lea.vmem %s2605_s22, 128 }
 0x20f   : > { %1592 = dma.vmem_to_hbm [thread:$0]  (%p2839_p1), %s2587_s5, 128, %s2601_s24, %s2840_s15, %s2110_s4, %s2111_s19, %s2112_s0  }
 0x210   : > { %p1937_p4 = scmp.ne.s32.totalorder %s2605_s22, %s1936_s14  ;;  %s2114_s16 = smov [#allocation13]  }
 0x211   : > { %s1940_s9 = sshll.u32 %s2114_s16, 4  ;;  %s1941_s9 = int_to_ptr.vmem [resolvable:$false] %s1940_s9 }
 0x212   : > { %p1938_p7 = pnand %p1937_p4, %p2839_p1  ;;  %s1942_s21 = scalar_lea.vmem %s1941_s9, 256 }
 0x213   : > { %p1943_p10 = scmp.lt.s32.totalorder %s2605_s22, %s1941_s9  ;;  %p1944_p13 = scmp.lt.s32.totalorder %s1942_s21, %s1936_s14 }
 0x214   : > { %p1939_p12 = pneg %p1938_p7 }
 0x215   : > { %p1945_p9 = por %p1944_p13, %p1943_p10 }
 0x217   : > { %p1946_p0 = pnand %p1945_p9, %p1939_p12 }
 0x219   : > { %1949 = shalt.err (!%p1946_p0)
}
 0x21a   : > { %s1950_s5 = scalar_lea.hbm %s2610_s20, 128  ;;  %s1954_s27 = scalar_lea.hbm %s2838_s17, 512 }
 0x21b   : > { %p1951_p5 = scmp.ne.s32.totalorder %s2610_s20, %s1950_s5  ;;  %p1955_p8 = scmp.lt.u32.totalorder %s2610_s20, %s2838_s17 }
 0x21c   : > { %p1956_p6 = scmp.lt.u32.totalorder %s1954_s27, %s1950_s5  ;;  %p1958_p4 = scmp.lt.u32.totalorder %s1950_s5, %s2610_s20 }
 0x21d   : > { %p1952_p2 = pnand %p1951_p5, %p2839_p1 }
 0x21e   : > { %p1957_p11 = por %p1956_p6, %p1955_p8 }
 0x21f   : > { %p1953_p3 = pneg %p1952_p2 }
 0x220   : > { %p1959_p7 = por %p1958_p4, %p1957_p11 }
 0x222   : > { %p1960_p12 = pnand %p1959_p7, %p1953_p3 }
 0x224   : > { %1963 = shalt.err (!%p1960_p12)
}
 0x225   : > { %1594 = dma.vmem_to_hbm [thread:$0]  (%p2839_p1), %s2605_s22, 128, %s2610_s20, %s2614_s13, %s2110_s4, %s2111_s19, %s2112_s0   ;;  %v1085_v42 = vrot.slane %v1084_v40, 2  ;;  %v1093_v43 = vadd.f32 %v1092_v41, %v2603_v39 }
 0x226   : > { %s1412_s14 = sshll.u32 %s2463_s3, 1  ;;  %s1487_s16 = sshll.u32 %s2207_s11, 5 }
 0x227   : > { %v1086_v45 = vadd.f32 %v1085_v42, %v1084_v40  ;;  %v1094_v46 = vrot.slane %v1093_v43, 2  ;;  %s431_s9 = scalar_lea.vmem [#allocation14], %s1412_s14  ;;  %s2841_s23 = sld [smem:[#allocation34_spill]] }
 0x228   : > { %s1175_s21 = sshll.u32 %s431_s9, 4  ;;  %s1117_s20 = scalar_lea.sflag [#allocation15], %s2463_s3  ;;  %s2702_s21 = int_to_ptr.vmem [resolvable:$true] %s1175_s21 }
 0x229   : > { %v1087_v47 = vrot.slane %v1086_v45, 1  ;;  %v1095_v48 = vadd.f32 %v1094_v46, %v1093_v43  ;;  %s1964_s13 = scalar_lea.vmem %s2702_s21, 32  ;;  %s2115_s11 = smov [#allocation14]  }
 0x22a   : > { %p1965_p10 = scmp.ne.s32.totalorder %s2702_s21, %s1964_s13  ;;  %s1968_s4 = sshll.u32 %s2115_s11, 4  ;;  %s1969_s4 = int_to_ptr.vmem [resolvable:$false] %s1968_s4 }
 0x22b   : > { %v1096_v49 = vrot.slane %v1095_v48, 1  ;;  %v1088_v50 = vadd.f32 %v1087_v47, %v1086_v45  ;;  %s1970_s19 = scalar_lea.vmem %s1969_s4, 64  ;;  %p1971_p0 = scmp.lt.s32.totalorder %s2702_s21, %s1969_s4 }
 0x22c   : > { %p1966_p13 = pnand %p1965_p10, %p2839_p1  ;;  %p1972_p5 = scmp.lt.s32.totalorder %s1970_s19, %s1964_s13 }
 0x22d   : > { %v1097_v51 = vadd.f32 %v1096_v49, %v1095_v48  ;;  %s2700_s22 = scalar_lea.hbm %s2841_s23, %s1487_s16 }
 0x22e   : > { %p1967_p9 = pneg %p1966_p13  ;;  %p1973_p2 = por %p1972_p5, %p1971_p0 }
 0x22f   : > { %v1099_v52 = vsel %vm577_vm10, %v1088_v50, %v1097_v51 }
 0x230   : > { %1100 = vst [vmem:[%s431_s9] sm:$0x3] %v1099_v52  ;;  %p1974_p3 = pnand %p1973_p2, %p1967_p9 }
 0x232   : > { %1977 = shalt.err (!%p1974_p3)
}
 0x233   : > { %s1978_s3 = scalar_lea.hbm %s2700_s22, 32  ;;  %s1982_s29 = scalar_lea.hbm %s2841_s23, 128 }
 0x234   : > { %p1979_p8 = scmp.ne.s32.totalorder %s2700_s22, %s1978_s3  ;;  %p1983_p4 = scmp.lt.u32.totalorder %s2700_s22, %s2841_s23 }
 0x235   : > { %p1984_p7 = scmp.lt.u32.totalorder %s1982_s29, %s1978_s3  ;;  %p1986_p10 = scmp.lt.u32.totalorder %s1978_s3, %s2700_s22 }
 0x236   : > { %p1980_p6 = pnand %p1979_p8, %p2839_p1 }
 0x237   : > { %p1985_p12 = por %p1984_p7, %p1983_p4 }
 0x238   : > { %p1981_p11 = pneg %p1980_p6 }
 0x239   : > { %p1987_p13 = por %p1986_p10, %p1985_p12 }
 0x23b   : > { %p1988_p9 = pnand %p1987_p13, %p1981_p11 }
 0x23d   : > { %1991 = shalt.err (!%p1988_p9)
}
 0x23e   : > { %1595 = dma.vmem_to_hbm [thread:$0]  (%p2839_p1), %s2702_s21, 32, %s2700_s22, %s1117_s20  }
 0x23f PF: > { %s2842_s16 = sld [smem:[#allocation27_spill]]  ;;  %p1630_p0 = scmp.ge.s32.totalorder %s2098_s10, 2 }
 0x240   : > { %s1187_s9 = sand.u32 1, %s2086_s30  }
 0x241   : > { %s1188_s5 = scalar_lea.sflag [#allocation4], %s1187_s9 }
 0x245   : > { %p2843_p5 = scmp.ne.s32.totalorder %s2842_s16, 0 }
 0x247   : > { %p1615_p2 = pnand %p1630_p0, %p2843_p5 }
 0x249   : > { %2049 = dma.done.wait (!%p1615_p2), %s1188_s5, 128  }
 0x24a   : > { %2051 = vsyncadd (!%p1615_p2), %s1188_s5, 4294967168  ;;  %s2844_s24 = sadd.s32 4294967294, %s2098_s10  }
 0x24b   : > { %s1196_s13 = sand.u32 1, %s2844_s24  }
 0x24c   : > { %s1197_s11 = scalar_lea.sflag [#allocation12], %s1196_s13 }
 0x24d   : > { %2053 = dma.done.wait (!%p1615_p2), %s1197_s11, 256  }
 0x24e   : > { %2055 = vsyncadd (!%p1615_p2), %s1197_s11, 4294967040  ;;  %s1215_s6 = scalar_lea.sflag [#allocation15], %s1187_s9 }
 0x24f   : > { %2057 = dma.done.wait (!%p1615_p2), %s1215_s6, 32  }
 0x250   : > { %2059 = vsyncadd (!%p1615_p2), %s1215_s6, 4294967264  ;;  %s2845_s30 = sld [smem:[#allocation23_spill]]  ;;  %s2846_s29 = sld [smem:[#allocation25_spill]] }
 0x251   : > { %s2847_s21 = sld [smem:[#allocation24_spill]]  ;;  %s2848_s9 = sld [smem:[#allocation26_spill]] }
 0x252   : > { %p31_p1 = scmp.ge.s32.totalorder %s2210_s12, 6   ;;  %s2849_s24 = smov %s2066_s25 }
 0x253   : > { %s2850_s25 = smov %s2070_s26  ;;  %s2851_s26 = smov %s2416_s18 }
 0x254   : > { %s2852_s27 = smov %s2078_s28  ;;  %s2856_s10 = smov %s2210_s12 }
 0x255   :  { %33 = sbr.rel (!%p31_p1) target bundleno = 23 (0x17), region = 158 }
 0x256   : > { %s2853_s28 = smov %s2845_s30  ;;  %s2854_s30 = smov %s2090_s8 }
 0x257   : > { %s2855_s8 = smov %s2847_s21 }
 0x25c   :  { %1220 = vsyncpa [#allocation3], 1 }
 0x25d   :  { %1222 = vsyncpa [#allocation3 + $0x1], 1 }
 0x25e   :  { %1223 = vsyncpa [#allocation6], 1 }
 0x25f   :  { %1225 = vsyncpa [#allocation6 + $0x1], 1 }
 0x260   :  { %1226 = vsyncpa [#allocation9], 1 }
 0x261   :  { %1227 = vsyncpa [#allocation4], 1 }
 0x262   :  { %1229 = vsyncpa [#allocation4 + $0x1], 1 }
 0x263   :  { %1230 = vsyncpa [#allocation12], 1 }
 0x264   :  { %1232 = vsyncpa [#allocation12 + $0x1], 1 }
 0x265   :  { %1233 = vsyncpa [#allocation15], 1 }
 0x266   :  { %1235 = vsyncpa [#allocation15 + $0x1], 1 }

</bundles_post_ra>
